<compile_context>
chip_gen: v7x
topology: tpu7x:2x2x1
jax: 0.10.0
libtpu: 0.0.40
codegen_flags: <defaults>
</compile_context>

<pallas_src>
import math
from functools import partial

import jax
import jax.numpy as jnp
from jax import lax
from jax.experimental import pallas as pl
from jax.experimental.pallas import tpu as pltpu

_INV_SQRT2 = 1.0 / math.sqrt(2.0)
_NEG_BIG = -1e30                      # finite causal-mask sentinel (NaN-safe vs -inf)
_VMEM_LIMIT = 64 * 1024 * 1024        # explicit scoped-VMEM cap (<= v7x physical 64 MiB)
_USE_APPROX_GELU = False              # True -> tanh GELU (single EUP op, small numeric diff)


def _cparams(sem):
    return pltpu.CompilerParams(dimension_semantics=sem,
                                vmem_limit_bytes=_VMEM_LIMIT)


# ----------------------------- in-kernel helpers -----------------------------

def _layernorm(x, gamma, beta, eps=1e-5):
    # x: (T, C) f32, gamma/beta: (1, C)  (biased variance, same as nn.LayerNorm)
    mean = jnp.mean(x, axis=-1, keepdims=True)
    var = jnp.mean((x - mean) ** 2, axis=-1, keepdims=True)
    inv = lax.rsqrt(var + eps)
    return (x - mean) * inv * gamma + beta


def _gelu(x):
    if _USE_APPROX_GELU:
        c = math.sqrt(2.0 / math.pi)
        return 0.5 * x * (1.0 + jnp.tanh(c * (x + 0.044715 * x * x * x)))
    # nn.GELU() default: exact erf-based GELU (f32)
    return 0.5 * x * (1.0 + lax.erf(x * _INV_SQRT2))


def _pick_seq_tile(T):
    if T <= 128:
        return T
    for t in (256, 128):
        if T % t == 0:
            return t
    return T


def _pick_vocab_tile(V):
    v128 = 128 * ((V + 127) // 128)     # lane-dense
    return min(v128, 512)


# ----------------------- kernel A: LN1 + fused QKV projection -----------------------

def _qkv_kernel(n_head, x_ref, g1_ref, b1_ref, wqkv_ref, bqkv_ref, q_ref, kv_ref):
    x = x_ref[0]                                          # (TT, C) f32
    TT, C = x.shape
    hd = C // n_head
    xn = _layernorm(x, g1_ref[...], b1_ref[...])          # f32
    # one fused (TT,C) x (C,3C) bf16 MXU matmul, f32 accumulation; Q pre-scaled.
    qkv = jnp.dot(xn.astype(jnp.bfloat16), wqkv_ref[...],
                  preferred_element_type=jnp.float32) + bqkv_ref[...]   # (TT, 3C)
    # head-major relayout happens exactly once, here, so the attention kernel
    # never pays the XLU transpose.
    q = qkv[:, :C].reshape(TT, n_head, hd).transpose(1, 0, 2)           # (H, TT, hd)
    kv = qkv[:, C:].reshape(TT, 2 * n_head, hd).transpose(1, 0, 2)      # (2H, TT, hd)
    q_ref[0] = q.astype(jnp.bfloat16)
    kv_ref[0] = kv.astype(jnp.bfloat16)


def qkv_project(x, p, n_head):
    B, T, C = x.shape
    hd = C // n_head
    TT = _pick_seq_tile(T)
    return pl.pallas_call(
        partial(_qkv_kernel, n_head),
        out_shape=[jax.ShapeDtypeStruct((B, n_head, T, hd), jnp.bfloat16),
                   jax.ShapeDtypeStruct((B, 2 * n_head, T, hd), jnp.bfloat16)],
        grid=(B, T // TT),
        in_specs=[
            pl.BlockSpec((1, TT, C), lambda b, t: (b, t, 0)),
            pl.BlockSpec((1, C), lambda b, t: (0, 0)),
            pl.BlockSpec((1, C), lambda b, t: (0, 0)),
            pl.BlockSpec((C, 3 * C), lambda b, t: (0, 0)),
            pl.BlockSpec((1, 3 * C), lambda b, t: (0, 0)),
        ],
        out_specs=[
            pl.BlockSpec((1, n_head, TT, hd), lambda b, t: (b, 0, t, 0)),
            pl.BlockSpec((1, 2 * n_head, TT, hd), lambda b, t: (b, 0, t, 0)),
        ],
        compiler_params=_cparams(("parallel", "parallel")),
    )(x, p["ln1_g"], p["ln1_b"], p["wqkv"], p["bqkv"])


# --------------- kernel B: attention + proj + residual + LN2 + MLP ---------------

def _attn_mlp_kernel(n_head, q_tile,
                     x_ref, q_ref, kv_ref,
                     wp_ref, bp_ref, g2_ref, b2_ref,
                     w1_ref, bf1_ref, w2_ref, bf2_ref,
                     o_ref):
    qt = pl.program_id(1)
    x = x_ref[0]                                          # (TQ, C) f32 residual stream
    q = q_ref[0]                                          # (H, TQ, hd) bf16, pre-scaled
    kv = kv_ref[0]                                        # (2H, T, hd) bf16
    k = kv[:n_head]
    v = kv[n_head:]
    TQ, _ = x.shape
    T = k.shape[1]

    # scores for this query tile only: (H, TQ, T) f32 -> VMEM bounded by tile size
    s = jnp.einsum('hqd,hkd->hqk', q, k, preferred_element_type=jnp.float32)
    rows = qt * q_tile + lax.broadcasted_iota(jnp.int32, (TQ, T), 0)
    cols = lax.broadcasted_iota(jnp.int32, (TQ, T), 1)
    s = jnp.where((cols <= rows)[None, :, :], s, _NEG_BIG)

    m = jnp.max(s, axis=-1, keepdims=True)
    e = jnp.exp(s - m)
    p = e * pl.reciprocal(jnp.sum(e, axis=-1, keepdims=True), approx=True)

    y = jnp.einsum('hqk,hkd->hqd', p.astype(jnp.bfloat16), v,
                   preferred_element_type=jnp.float32)    # (H, TQ, hd) f32
    y = y.astype(jnp.bfloat16)

    # per-head output projection, accumulated in f32 (no head-merge relayout)
    attn = bp_ref[...] + sum(
        jnp.dot(y[h], wp_ref[h], preferred_element_type=jnp.float32)
        for h in range(n_head))                           # (TQ, C) f32

    x = x + attn

    # ---- LN2 + MLP (4C hidden) ----
    xn2 = _layernorm(x, g2_ref[...], b2_ref[...])
    h1 = jnp.dot(xn2.astype(jnp.bfloat16), w1_ref[...],
                 preferred_element_type=jnp.float32) + bf1_ref[...]
    h1 = _gelu(h1)
    ff = jnp.dot(h1.astype(jnp.bfloat16), w2_ref[...],
                 preferred_element_type=jnp.float32) + bf2_ref[...]
    o_ref[0] = x + ff


def attn_mlp(x, q, kv, p, n_head):
    B, T, C = x.shape
    hd = C // n_head
    TQ = _pick_seq_tile(T)
    return pl.pallas_call(
        partial(_attn_mlp_kernel, n_head, TQ),
        out_shape=jax.ShapeDtypeStruct((B, T, C), jnp.float32),
        grid=(B, T // TQ),
        in_specs=[
            pl.BlockSpec((1, TQ, C), lambda b, t: (b, t, 0)),                 # x tile
            pl.BlockSpec((1, n_head, TQ, hd), lambda b, t: (b, 0, t, 0)),     # q tile
            pl.BlockSpec((1, 2 * n_head, T, hd), lambda b, t: (b, 0, 0, 0)),  # full kv
            pl.BlockSpec((n_head, hd, C), lambda b, t: (0, 0, 0)),            # wp heads
            pl.BlockSpec((1, C), lambda b, t: (0, 0)),                        # bp
            pl.BlockSpec((1, C), lambda b, t: (0, 0)),                        # ln2_g
            pl.BlockSpec((1, C), lambda b, t: (0, 0)),                        # ln2_b
            pl.BlockSpec((C, 4 * C), lambda b, t: (0, 0)),                    # w1
            pl.BlockSpec((1, 4 * C), lambda b, t: (0, 0)),                    # b1
            pl.BlockSpec((4 * C, C), lambda b, t: (0, 0)),                    # w2
            pl.BlockSpec((1, C), lambda b, t: (0, 0)),                        # b2
        ],
        out_specs=pl.BlockSpec((1, TQ, C), lambda b, t: (b, t, 0)),
        compiler_params=_cparams(("parallel", "parallel")),
    )(x, q, kv, p["wp_h"], p["bp"], p["ln2_g"], p["ln2_b"],
      p["w1"], p["b1"], p["w2"], p["b2"])


# ------------------------------ final LN + lm_head ----------------------------

def _lnf_kernel(x_ref, g_ref, b_ref, o_ref):
    o_ref[0] = _layernorm(x_ref[0], g_ref[...], b_ref[...]).astype(o_ref.dtype)


def final_layernorm(x, p):
    B, T, C = x.shape
    # Hoisted out of the vocab-tiled head kernel; emits bf16 matmul operand.
    return pl.pallas_call(
        _lnf_kernel,
        out_shape=jax.ShapeDtypeStruct((B, T, C), jnp.bfloat16),
        grid=(B,),
        in_specs=[pl.BlockSpec((1, T, C), lambda b: (b, 0, 0)),
                  pl.BlockSpec((1, C), lambda b: (0, 0)),
                  pl.BlockSpec((1, C), lambda b: (0, 0))],
        out_specs=pl.BlockSpec((1, T, C), lambda b: (b, 0, 0)),
        compiler_params=_cparams(("parallel",)),
    )(x, p["lnf_g"], p["lnf_b"])


def _head_kernel(x_ref, wh_ref, bh_ref, o_ref):
    o_ref[0] = jnp.dot(x_ref[0], wh_ref[...],
                       preferred_element_type=jnp.float32) + bh_ref[...]


def lm_head(xn, p):
    B, T, C = xn.shape
    V_pad = p["wh_t"].shape[1]
    tile_v = p["tile_v"]
    logits = pl.pallas_call(
        _head_kernel,
        out_shape=jax.ShapeDtypeStruct((B, T, V_pad), jnp.float32),
        grid=(B, V_pad // tile_v),
        in_specs=[pl.BlockSpec((1, T, C), lambda b, j: (b, 0, 0)),
                  pl.BlockSpec((C, tile_v), lambda b, j: (0, j)),
                  pl.BlockSpec((1, tile_v), lambda b, j: (0, j))],
        out_specs=pl.BlockSpec((1, T, tile_v), lambda b, j: (b, 0, j)),
        compiler_params=_cparams(("parallel", "parallel")),
    )(xn, p["wh_t"], p["bh"])
    return logits[:, :, :p["vocab"]]


# ----------------------------- parameter construction -------------------------

def init_params(key, vocab_size, block_size, n_layer, n_head, n_embd):
    """Parameters in the PyTorch (out_features, in_features) convention."""
    keys = jax.random.split(key, 4 + n_layer)
    std = 0.02

    def lin(k, out_f, in_f):
        kw, _ = jax.random.split(k)
        w = jax.random.normal(kw, (out_f, in_f), jnp.float32) * std
        b = jnp.zeros((1, out_f), jnp.float32)
        return w, b

    params = {
        "tok_emb": jax.random.normal(keys[0], (vocab_size, n_embd), jnp.float32) * std,
        "pos_emb": jax.random.normal(keys[1], (block_size, n_embd), jnp.float32) * std,
        "lnf_g": jnp.ones((1, n_embd), jnp.float32),
        "lnf_b": jnp.zeros((1, n_embd), jnp.float32),
        "blocks": [],
    }
    wh, bh = lin(keys[2], vocab_size, n_embd)
    params["wh"], params["bh"] = wh, bh

    for li in range(n_layer):
        bk = jax.random.split(keys[4 + li], 6)
        wq, bq = lin(bk[0], n_embd, n_embd)
        wk_, bk_ = lin(bk[1], n_embd, n_embd)
        wv, bv = lin(bk[2], n_embd, n_embd)
        wp, bp = lin(bk[3], n_embd, n_embd)
        w1, b1 = lin(bk[4], 4 * n_embd, n_embd)
        w2, b2 = lin(bk[5], n_embd, 4 * n_embd)
        params["blocks"].append({
            "ln1_g": jnp.ones((1, n_embd), jnp.float32),
            "ln1_b": jnp.zeros((1, n_embd), jnp.float32),
            "ln2_g": jnp.ones((1, n_embd), jnp.float32),
            "ln2_b": jnp.zeros((1, n_embd), jnp.float32),
            "wq": wq, "bq": bq, "wk": wk_, "bk": bk_, "wv": wv, "bv": bv,
            "wp": wp, "bp": bp,
            "w1": w1, "b1": b1, "w2": w2, "b2": b2,
        })
    return params


def prepare_params(params, n_head):
    """One-time kernel-ready weight prep (fusion, transposes, scale fold, bf16 cast)."""
    C = params["tok_emb"].shape[1]
    hd = C // n_head
    scale = 1.0 / math.sqrt(hd)

    prepped = {
        "tok_emb": params["tok_emb"],
        "pos_emb": params["pos_emb"],
        "lnf_g": params["lnf_g"],
        "lnf_b": params["lnf_b"],
    }

    # lm_head: pre-transpose, pad vocab to a lane-dense multiple of the tile, bf16.
    V = params["wh"].shape[0]
    tile_v = _pick_vocab_tile(V)
    V_pad = tile_v * ((V + tile_v - 1) // tile_v)
    wh_t = jnp.pad(params["wh"].T, ((0, 0), (0, V_pad - V))).astype(jnp.bfloat16)
    bh = jnp.pad(params["bh"], ((0, 0), (0, V_pad - V)))
    prepped.update({"wh_t": wh_t, "bh": bh, "vocab": V, "tile_v": tile_v})

    blocks = []
    for p in params["blocks"]:
        # fused QKV with 1/sqrt(hd) folded into the Q columns (weight and bias)
        wqkv = jnp.concatenate([p["wq"].T * scale, p["wk"].T, p["wv"].T], axis=1)
        bqkv = jnp.concatenate([p["bq"] * scale, p["bk"], p["bv"]], axis=1)
        blocks.append({
            "ln1_g": p["ln1_g"], "ln1_b": p["ln1_b"],
            "ln2_g": p["ln2_g"], "ln2_b": p["ln2_b"],
            "wqkv": wqkv.astype(jnp.bfloat16),            # (C, 3C)
            "bqkv": bqkv,                                  # (1, 3C) f32
            "wp_h": p["wp"].T.reshape(n_head, hd, C).astype(jnp.bfloat16),
            "bp": p["bp"],
            "w1": p["w1"].T.astype(jnp.bfloat16), "b1": p["b1"],
            "w2": p["w2"].T.astype(jnp.bfloat16), "b2": p["b2"],
        })
    prepped["blocks"] = blocks
    return prepped


# --------------------------------- full forward --------------------------------

def gpt2lite_forward(idx, prepped, n_head):
    """idx: (B, T) int32 token ids. Returns logits (B, T, vocab)."""
    B, T = idx.shape
    # embedding lookups are glue (gather) in plain JAX
    tok = jnp.take(prepped["tok_emb"], idx, axis=0)            # (B, T, C) f32
    pos = prepped["pos_emb"][:T][None, :, :]                   # (1, T, C)
    x = tok + pos
    for bp in prepped["blocks"]:
        q, kv = qkv_project(x, bp, n_head)
        x = attn_mlp(x, q, kv, bp, n_head)
    xn = final_layernorm(x, prepped)
    return lm_head(xn, prepped)


# ------------------------------------ main --------------------------------------

if __name__ == "__main__":
    vocab_size = 64
    block_size = 16
    n_layer = 2
    n_head = 4
    n_embd = 32
    B, T = 2, 8

    key = jax.random.PRNGKey(0)
    pkey, ikey = jax.random.split(key)
    params = init_params(pkey, vocab_size, block_size, n_layer, n_head, n_embd)
    prepped = prepare_params(params, n_head)
    idx = jax.random.randint(ikey, (B, T), 0, vocab_size, dtype=jnp.int32)

    logits = gpt2lite_forward(idx, prepped, n_head)
    jax.block_until_ready(logits)
    assert logits.shape == (B, T, vocab_size)
    assert bool(jnp.all(jnp.isfinite(logits)))
    print("KERNEL_OK")
</pallas_src>

<mosaic_0001>
module attributes {stable_mosaic.version = 11 : i64} {
  func.func @_qkv_kernel(%arg0: i32, %arg1: i32, %arg2: memref<1x8x32xf32, #tpu.memory_space<vmem>>, %arg3: memref<1x32xf32, #tpu.memory_space<vmem>>, %arg4: memref<1x32xf32, #tpu.memory_space<vmem>>, %arg5: memref<32x96xbf16, #tpu.memory_space<vmem>>, %arg6: memref<1x96xf32, #tpu.memory_space<vmem>>, %arg7: memref<1x4x8x8xbf16, #tpu.memory_space<vmem>>, %arg8: memref<1x8x8x8xbf16, #tpu.memory_space<vmem>>) attributes {dimension_semantics = [#tpu.dimension_semantics<parallel>, #tpu.dimension_semantics<parallel>], iteration_bounds = array<i64: 2, 1>, scalar_prefetch = 0 : i64, scratch_operands = 0 : i64, tpu.core_type = #tpu.core_type<tc>, window_params = [{transform_indices = @transform_0, window_bounds = array<i64: 1, 8, 32>}, {pipeline_mode = #tpu.pipeline_mode<synchronous>, transform_indices = @transform_1, window_bounds = array<i64: 1, 32>}, {pipeline_mode = #tpu.pipeline_mode<synchronous>, transform_indices = @transform_2, window_bounds = array<i64: 1, 32>}, {pipeline_mode = #tpu.pipeline_mode<synchronous>, transform_indices = @transform_3, window_bounds = array<i64: 32, 96>}, {pipeline_mode = #tpu.pipeline_mode<synchronous>, transform_indices = @transform_4, window_bounds = array<i64: 1, 96>}, {transform_indices = @transform_5, window_bounds = array<i64: 1, 4, 8, 8>}, {transform_indices = @transform_6, window_bounds = array<i64: 1, 8, 8, 8>}]} {
    %c0 = arith.constant 0 : index
    %c0_0 = arith.constant 0 : index
    %c0_1 = arith.constant 0 : index
    %0 = vector.load %arg2[%c0, %c0_0, %c0_1] : memref<1x8x32xf32, #tpu.memory_space<vmem>>, vector<1x8x32xf32>
    %1 = vector.shape_cast %0 : vector<1x8x32xf32> to vector<8x32xf32>
    %c0_2 = arith.constant 0 : index
    %c0_3 = arith.constant 0 : index
    %2 = vector.load %arg3[%c0_2, %c0_3] : memref<1x32xf32, #tpu.memory_space<vmem>>, vector<1x32xf32>
    %c0_4 = arith.constant 0 : index
    %c0_5 = arith.constant 0 : index
    %3 = vector.load %arg4[%c0_4, %c0_5] : memref<1x32xf32, #tpu.memory_space<vmem>>, vector<1x32xf32>
    %cst = arith.constant dense<0.000000e+00> : vector<8xf32>
    %4 = vector.multi_reduction <add>, %1, %cst [1] : vector<8x32xf32> to vector<8xf32>
    %5 = vector.shape_cast %4 : vector<8xf32> to vector<8x1xf32>
    %cst_6 = arith.constant 3.200000e+01 : f32
    %6 = vector.broadcast %cst_6 : f32 to vector<8x1xf32>
    %7 = arith.divf %5, %6 : vector<8x1xf32>
    %8 = vector.broadcast %7 : vector<8x1xf32> to vector<8x32xf32>
    %9 = arith.subf %1, %8 : vector<8x32xf32>
    %10 = arith.mulf %9, %9 : vector<8x32xf32>
    %cst_7 = arith.constant dense<0.000000e+00> : vector<8xf32>
    %11 = vector.multi_reduction <add>, %10, %cst_7 [1] : vector<8x32xf32> to vector<8xf32>
    %12 = vector.shape_cast %11 : vector<8xf32> to vector<8x1xf32>
    %cst_8 = arith.constant 3.200000e+01 : f32
    %13 = vector.broadcast %cst_8 : f32 to vector<8x1xf32>
    %14 = arith.divf %12, %13 : vector<8x1xf32>
    %cst_9 = arith.constant 9.99999974E-6 : f32
    %15 = vector.broadcast %cst_9 : f32 to vector<8x1xf32>
    %16 = arith.addf %14, %15 : vector<8x1xf32>
    %17 = math.rsqrt %16 : vector<8x1xf32>
    %18 = vector.broadcast %7 : vector<8x1xf32> to vector<8x32xf32>
    %19 = arith.subf %1, %18 : vector<8x32xf32>
    %20 = vector.broadcast %17 : vector<8x1xf32> to vector<8x32xf32>
    %21 = arith.mulf %19, %20 : vector<8x32xf32>
    %22 = vector.broadcast %2 : vector<1x32xf32> to vector<8x32xf32>
    %23 = arith.mulf %21, %22 : vector<8x32xf32>
    %24 = vector.broadcast %3 : vector<1x32xf32> to vector<8x32xf32>
    %25 = arith.addf %23, %24 : vector<8x32xf32>
    %26 = arith.truncf %25 : vector<8x32xf32> to vector<8x32xbf16>
    %c0_10 = arith.constant 0 : index
    %c0_11 = arith.constant 0 : index
    %27 = vector.load %arg5[%c0_10, %c0_11] : memref<32x96xbf16, #tpu.memory_space<vmem>>, vector<32x96xbf16>
    %cst_12 = arith.constant dense<0.000000e+00> : vector<8x96xf32>
    %28 = tpu.matmul %26, %27, %cst_12 {dimension_numbers = #tpu.dot_dimension_numbers<[1], [0], [0], [1], [0, 0, 1, 1], [], []>} : vector<8x32xbf16>, vector<32x96xbf16>, vector<8x96xf32> -> vector<8x96xf32>
    %c0_13 = arith.constant 0 : index
    %c0_14 = arith.constant 0 : index
    %29 = vector.load %arg6[%c0_13, %c0_14] : memref<1x96xf32, #tpu.memory_space<vmem>>, vector<1x96xf32>
    %30 = vector.broadcast %29 : vector<1x96xf32> to vector<8x96xf32>
    %31 = arith.addf %28, %30 : vector<8x96xf32>
    %32 = vector.extract_strided_slice %31 {offsets = [0, 0], sizes = [8, 32], strides = [1, 1]} : vector<8x96xf32> to vector<8x32xf32>
    %33 = vector.shape_cast %32 : vector<8x32xf32> to vector<8x4x8xf32>
    %34 = tpu.transpose %33, [1, 0, 2] : vector<8x4x8xf32> -> vector<4x8x8xf32>
    %35 = vector.extract_strided_slice %31 {offsets = [0, 32], sizes = [8, 64], strides = [1, 1]} : vector<8x96xf32> to vector<8x64xf32>
    %36 = vector.shape_cast %35 : vector<8x64xf32> to vector<8x8x8xf32>
    %37 = tpu.transpose %36, [1, 0, 2] : vector<8x8x8xf32> -> vector<8x8x8xf32>
    %38 = arith.truncf %34 : vector<4x8x8xf32> to vector<4x8x8xbf16>
    %c0_15 = arith.constant 0 : index
    %c0_16 = arith.constant 0 : index
    %c0_17 = arith.constant 0 : index
    %c0_18 = arith.constant 0 : index
    %39 = vector.load %arg7[%c0_15, %c0_16, %c0_17, %c0_18] : memref<1x4x8x8xbf16, #tpu.memory_space<vmem>>, vector<1x4x8x8xbf16>
    %40 = vector.shape_cast %39 : vector<1x4x8x8xbf16> to vector<4x8x8xbf16>
    %41 = vector.shape_cast %38 : vector<4x8x8xbf16> to vector<1x4x8x8xbf16>
    tpu.vector_store %arg7[%c0_15, %c0_16, %c0_17, %c0_18], %41 {strides = array<i32>} : memref<1x4x8x8xbf16, #tpu.memory_space<vmem>>, vector<1x4x8x8xbf16>,
    %42 = arith.truncf %37 : vector<8x8x8xf32> to vector<8x8x8xbf16>
    %c0_19 = arith.constant 0 : index
    %c0_20 = arith.constant 0 : index
    %c0_21 = arith.constant 0 : index
    %c0_22 = arith.constant 0 : index
    %43 = vector.load %arg8[%c0_19, %c0_20, %c0_21, %c0_22] : memref<1x8x8x8xbf16, #tpu.memory_space<vmem>>, vector<1x8x8x8xbf16>
    %44 = vector.shape_cast %43 : vector<1x8x8x8xbf16> to vector<8x8x8xbf16>
    %45 = vector.shape_cast %42 : vector<8x8x8xbf16> to vector<1x8x8x8xbf16>
    tpu.vector_store %arg8[%c0_19, %c0_20, %c0_21, %c0_22], %45 {strides = array<i32>} : memref<1x8x8x8xbf16, #tpu.memory_space<vmem>>, vector<1x8x8x8xbf16>,
    return
  }
  func.func @transform_0(%arg0: i32, %arg1: i32) -> (i32, i32, i32) {
    %c0_i32 = arith.constant 0 : i32
    %c0_i32_0 = arith.constant 0 : i32
    return %arg0, %arg1, %c0_i32 : i32, i32, i32
  }
  func.func @transform_1(%arg0: i32, %arg1: i32) -> (i32, i32) {
    %c0_i32 = arith.constant 0 : i32
    %c0_i32_0 = arith.constant 0 : i32
    %c0_i32_1 = arith.constant 0 : i32
    return %c0_i32, %c0_i32_0 : i32, i32
  }
  func.func @transform_2(%arg0: i32, %arg1: i32) -> (i32, i32) {
    %c0_i32 = arith.constant 0 : i32
    %c0_i32_0 = arith.constant 0 : i32
    %c0_i32_1 = arith.constant 0 : i32
    return %c0_i32, %c0_i32_0 : i32, i32
  }
  func.func @transform_3(%arg0: i32, %arg1: i32) -> (i32, i32) {
    %c0_i32 = arith.constant 0 : i32
    %c0_i32_0 = arith.constant 0 : i32
    %c0_i32_1 = arith.constant 0 : i32
    return %c0_i32, %c0_i32_0 : i32, i32
  }
  func.func @transform_4(%arg0: i32, %arg1: i32) -> (i32, i32) {
    %c0_i32 = arith.constant 0 : i32
    %c0_i32_0 = arith.constant 0 : i32
    %c0_i32_1 = arith.constant 0 : i32
    return %c0_i32, %c0_i32_0 : i32, i32
  }
  func.func @transform_5(%arg0: i32, %arg1: i32) -> (i32, i32, i32, i32) {
    %c0_i32 = arith.constant 0 : i32
    %c0_i32_0 = arith.constant 0 : i32
    %c0_i32_1 = arith.constant 0 : i32
    return %arg0, %c0_i32, %arg1, %c0_i32_0 : i32, i32, i32, i32
  }
  func.func @transform_6(%arg0: i32, %arg1: i32) -> (i32, i32, i32, i32) {
    %c0_i32 = arith.constant 0 : i32
    %c0_i32_0 = arith.constant 0 : i32
    %c0_i32_1 = arith.constant 0 : i32
    return %arg0, %c0_i32, %arg1, %c0_i32_0 : i32, i32, i32, i32
  }
}

</mosaic_0001>

<bundles_post_ra>
// kernel: tpu_custom_call.1
= control target key start
LH: loop header
LB: loop body
LE: loop exit
PB: predicated region body
PF: predicated region fallthrough
CT: control target
= control target key end

     0   :  { %s2041_s0 = inlined_call_operand.hbm [shape: f32[2,8,32], index: 0, kind: input, shape index: {}]   ;;  %s2042_s1 = inlined_call_operand.hbm [shape: f32[1,32], index: 1, kind: input, shape index: {}]   ;;  %s2043_s2 = inlined_call_operand.hbm [shape: f32[1,32], index: 2, kind: input, shape index: {}]   ;;  %s2044_s3 = inlined_call_operand.hbm [shape: bf16[32,96], index: 3, kind: input, shape index: {}]   ;;  %s2045_s4 = inlined_call_operand.hbm [shape: f32[1,96], index: 4, kind: input, shape index: {}]   ;;  %s2046_s5 = inlined_call_operand.hbm [shape: bf16[2,4,8,8], index: 5, kind: output, shape index: {0}]   ;;  %s2047_s6 = inlined_call_operand.hbm [shape: bf16[2,8,8,8], index: 6, kind: output, shape index: {1}]  }
   0x1   :  { %2052 = sst [smem:[#allocation19_spill]] %s2042_s1 }
   0x2   :  { %12 = vsyncpa [#allocation3], 0 }
   0x3   :  { %14 = vsyncpa [#allocation3 + $0x1], 0 }
   0x4   :  { %15 = vsyncpa [#allocation6], 0 }
   0x5   :  { %16 = vsyncpa [#allocation9], 0 }
   0x6   :  { %17 = vsyncpa [#allocation4], 0 }
   0x7   :  { %19 = vsyncpa [#allocation4 + $0x1], 0 }
   0x8   :  { %20 = vsyncpa [#allocation13], 0 }
   0x9   :  { %22 = vsyncpa [#allocation13 + $0x1], 0  ;;  %s1620_s21 = smov 0   ;;  %s1622_s22 = smov 0  }
   0xa   :  { %s1624_s23 = smov 0   ;;  %s1626_s24 = smov 0  }
   0xb   :  { %s1628_s25 = smov 0   ;;  %s1630_s26 = smov 0  }
   0xc LB: > { %s1115_s27 = sadd.s32 4294967295, %s1561_s26   ;;  %p1117_p0 = scmp.ge.s32.totalorder %s1561_s26, 1  ;;  %s1561_s26 = sphi %s1630_s26, %s28_s26   ;;  %s1557_s25 = sphi %s1628_s25, %s2073_s25   ;;  %s1553_s24 = sphi %s1626_s24, %s2072_s24   ;;  %s1549_s23 = sphi %s1624_s23, %s2071_s23   ;;  %s1545_s22 = sphi %s1622_s22, %s2070_s22   ;;  %s1541_s21 = sphi %s1620_s21, %s2069_s21  }
   0xd   : > { %p1654_p1 = scmp.eq.s32.totalorder %s1115_s27, 0  ;;  %p213_p2 = scmp.lt.s32.totalorder %s1561_s26, 3 }
   0xe   : > { %s1563_s30 = smov [#allocation5]   ;;  %s1564_s8 = smov [#allocation8]  }
   0xf   : > { %s2053_s28 = scalar_select %p1654_p1, 1, 0 }
  0x10   : > { %p1659_p3 = pnand %p1117_p0, %p213_p2  ;;  %s226_s7 = sshll.u32 %s1563_s30, 4  ;;  %s227_s7 = int_to_ptr.vmem [resolvable:$true] %s226_s7 }
  0x11   : > { %s247_s9 = sshll.u32 %s1564_s8, 4  ;;  %s1565_s11 = smov [#allocation7]   ;;  %s1672_s9 = int_to_ptr.vmem [resolvable:$true] %s247_s9 }
  0x12   : > { %s2054_s29 = scalar_select %p1659_p3, 1, 0 }
  0x13   : > { %p1192_p5 = pneg %p1659_p3  ;;  %s1674_s12 = sshll.u32 %s1565_s11, 4  ;;  %s238_s12 = int_to_ptr.vmem [resolvable:$true] %s1674_s12 }
  0x14   : > { %s2056_s1 = sld [smem:[#allocation19_spill]] }
  0x15   : > { %p1668_p6 = pnand %p1192_p5, %p1654_p1 }
  0x17   : > { %p1684_p8 = pneg %p1668_p6 }
  0x1a   : > { %s1297_s15 = scalar_lea.hbm %s2056_s1, 16 }
  0x1b   : > { %p1298_p7 = scmp.ne.s32.totalorder %s2056_s1, %s1297_s15  ;;  %p1304_p11 = scmp.lt.u32.totalorder %s1297_s15, %s2056_s1 }
  0x1d   : > { %p1300_p9 = pnand %p1684_p8, %p1298_p7 }
  0x1f   : > { %p1301_p10 = pneg %p1300_p9 }
  0x21   : > { %p1306_p12 = pnand %p1304_p11, %p1301_p10 }
  0x23   : > { %1309 = shalt.err (!%p1306_p12)
}
  0x24   : > { %s1310_s30 = scalar_lea.vmem %s227_s7, 16  ;;  %s1317_s8 = scalar_lea.vmem %s227_s7, 32 }
  0x25   : > { %p1311_p13 = scmp.ne.s32.totalorder %s227_s7, %s1310_s30  ;;  %p1318_p5 = scmp.lt.s32.totalorder %s227_s7, %s227_s7 }
  0x26   : > { %p1319_p4 = scmp.lt.s32.totalorder %s1317_s8, %s1310_s30 }
  0x27   : > { %p1313_p0 = pnand %p1311_p13, %p1684_p8 }
  0x28   : > { %p1320_p3 = por %p1319_p4, %p1318_p5 }
  0x29   : > { %p1314_p2 = pneg %p1313_p0 }
  0x2b   : > { %p1321_p1 = pnand %p1320_p3, %p1314_p2 }
  0x2d   : > { %1324 = shalt.err (!%p1321_p1)
}
  0x2e   : > { %1195 = dma.hbm_to_vmem [thread:$0]  (!%p1668_p6), %s2056_s1, 16, %s227_s7, [#allocation6]  }
  0x2f   : > { %s1325_s16 = scalar_lea.hbm %s2044_s3, 256 }
  0x30   : > { %p1326_p7 = scmp.ne.s32.totalorder %s2044_s3, %s1325_s16  ;;  %p1332_p1 = scmp.lt.u32.totalorder %s1325_s16, %s2044_s3 }
  0x32   : > { %p1328_p9 = pnand %p1326_p7, %p1684_p8 }
  0x34   : > { %p1329_p4 = pneg %p1328_p9 }
  0x36   : > { %p1334_p3 = pnand %p1332_p1, %p1329_p4 }
  0x38   : > { %1337 = shalt.err (!%p1334_p3)
}
  0x39   : > { %s1338_s7 = scalar_lea.vmem %s1672_s9, 256  ;;  %p1346_p13 = scmp.lt.s32.totalorder %s1672_s9, %s1672_s9 }
  0x3a   : > { %p1339_p10 = scmp.ne.s32.totalorder %s1672_s9, %s1338_s7  ;;  %p1347_p0 = scmp.lt.s32.totalorder %s1338_s7, %s1338_s7 }
  0x3c   : > { %p1341_p11 = pnand %p1339_p10, %p1684_p8  ;;  %p1348_p2 = por %p1347_p0, %p1346_p13 }
  0x3e   : > { %p1342_p12 = pneg %p1341_p11 }
  0x40   : > { %p1349_p5 = pnand %p1348_p2, %p1342_p12 }
  0x42   : > { %1352 = shalt.err (!%p1349_p5)
}
  0x43   : > { %s1566_s8 = smov 64   ;;  %s1567_s11 = smov 4  }
  0x44   : > { %1201 = dma.hbm_to_vmem [thread:$0]  (!%p1668_p6), %s2044_s3, 256, %s1672_s9, [#allocation9], %s1566_s8, %s1566_s8, %s1567_s11  }
  0x45   : > { %s1353_s17 = scalar_lea.hbm %s2043_s2, 16 }
  0x46   : > { %p1354_p7 = scmp.ne.s32.totalorder %s2043_s2, %s1353_s17  ;;  %p1360_p1 = scmp.lt.u32.totalorder %s1353_s17, %s2043_s2 }
  0x48   : > { %p1356_p9 = pnand %p1354_p7, %p1684_p8 }
  0x4a   : > { %p1357_p4 = pneg %p1356_p9 }
  0x4c   : > { %p1362_p3 = pnand %p1360_p1, %p1357_p4 }
  0x4e   : > { %1365 = shalt.err (!%p1362_p3)
}
  0x4f   : > { %s1366_s13 = scalar_lea.vmem %s238_s12, 16  ;;  %s1373_s9 = scalar_lea.vmem %s238_s12, 32 }
  0x50   : > { %p1367_p10 = scmp.ne.s32.totalorder %s238_s12, %s1366_s13  ;;  %p1374_p13 = scmp.lt.s32.totalorder %s238_s12, %s238_s12 }
  0x51   : > { %p1375_p0 = scmp.lt.s32.totalorder %s1373_s9, %s1366_s13 }
  0x52   : > { %p1369_p11 = pnand %p1367_p10, %p1684_p8 }
  0x53   : > { %p1376_p2 = por %p1375_p0, %p1374_p13 }
  0x54   : > { %p1370_p12 = pneg %p1369_p11 }
  0x56   : > { %p1377_p5 = pnand %p1376_p2, %p1370_p12 }
  0x58   : > { %1380 = shalt.err (!%p1377_p5)
}
  0x59   : > { %1198 = dma.hbm_to_vmem [thread:$0]  (!%p1668_p6), %s2043_s2, 16, %s238_s12, [#allocation6]  }
  0x5a   : > { %s1568_s14 = smov [#allocation10]   ;;  %s1381_s19 = scalar_lea.hbm %s2045_s4, 16 }
  0x5b   : > { %s261_s15 = sshll.u32 %s1568_s14, 4  ;;  %p1382_p7 = scmp.ne.s32.totalorder %s2045_s4, %s1381_s19  ;;  %s262_s15 = int_to_ptr.vmem [resolvable:$true] %s261_s15 }
  0x5c   : > { %p1388_p1 = scmp.lt.u32.totalorder %s1381_s19, %s2045_s4 }
  0x5d   : > { %p1384_p9 = pnand %p1382_p7, %p1684_p8 }
  0x5f   : > { %p1385_p4 = pneg %p1384_p9 }
  0x61   : > { %p1390_p3 = pnand %p1388_p1, %p1385_p4 }
  0x63   : > { %1393 = shalt.err (!%p1390_p3)
}
  0x64   : > { %s1394_s12 = scalar_lea.vmem %s262_s15, 16  ;;  %s1401_s9 = scalar_lea.vmem %s262_s15, 32 }
  0x65   : > { %p1395_p10 = scmp.ne.s32.totalorder %s262_s15, %s1394_s12  ;;  %p1402_p13 = scmp.lt.s32.totalorder %s262_s15, %s262_s15 }
  0x66   : > { %p1403_p0 = scmp.lt.s32.totalorder %s1401_s9, %s1394_s12 }
  0x67   : > { %p1397_p11 = pnand %p1395_p10, %p1684_p8 }
  0x68   : > { %p1404_p2 = por %p1403_p0, %p1402_p13 }
  0x69   : > { %p1398_p12 = pneg %p1397_p11 }
  0x6b   : > { %p1405_p5 = pnand %p1404_p2, %p1398_p12 }
  0x6d   : > { %1408 = shalt.err (!%p1405_p5)
}
  0x6e   : > { %1204 = dma.hbm_to_vmem [thread:$0]  (!%p1668_p6), %s2045_s4, 16, %s262_s15, [#allocation9]  }
  0x6f   : > { %s1116_s18 = sadd.s32 4294967294, %s1561_s26   ;;  %s40_s14 = sadd.s32 1, %s1557_s25 }
  0x70   : > { %p42_p8 = scmp.ge.s32.totalorder %s40_s14, 2  ;;  %s49_s10 = sadd.s32 1, %s1549_s23 }
  0x71   : > { %p56_p7 = scmp.ne.s32.totalorder %s1549_s23, %s1545_s22  ;;  %p57_p9 = scmp.eq.s32.totalorder %s1561_s26, 0 }
  0x72   : > { %s2075_s14 = smov (%p42_p8, %s40_s14), 0  ;;  %p62_p1 = scmp.ne.s32.totalorder %s1545_s22, %s1541_s21 }
  0x73   : > { %p1768_p4 = por %p57_p9, %p56_p7  ;;  %s44_s15 = ssub.s32 %s1557_s25, %s2075_s14 }
  0x74   : > { %p172_p6 = scmp.eq.s32.totalorder %s1115_s27, 1  ;;  %p47_p3 = scmp.eq.s32.totalorder %s44_s15, 0 }
  0x75   : > { %p2059_p10 = scmp.ne.s32.totalorder %s2053_s28, 0  ;;  %p178_p13 = scmp.eq.s32.totalorder %s1116_s18, 1 }
  0x76   : > { %p1784_p12 = por %p172_p6, %p56_p7  ;;  %p1220_p2 = scmp.lt.s32.totalorder %s1561_s26, 2 }
  0x77   : > { %p1780_p11 = por %p2059_p10, %p62_p1  ;;  %p1791_p0 = por %p178_p13, %p62_p1 }
  0x78   : > { %s2061_s19 = scalar_select %p1784_p12, 1, 0 }
  0x79   : > { %s1789_s20 = scalar_select %p47_p3, %s1549_s23, %s49_s10  }
  0x7a   : > { %s2062_s30 = scalar_select %p1791_p0, 1, 0 }
  0x7b   : > { %s272_s7 = sand.u32 1, %s1549_s23   ;;  %s1124_s27 = sshll.u32 %s1557_s25, 7 }
  0x7c   : > { %s1123_s13 = sshll.u32 %s272_s7, 3  ;;  %s1801_s8 = scalar_lea.hbm %s2041_s0, %s1124_s27 }
  0x7d   : > { %s276_s11 = scalar_lea.vmem [#allocation2], %s1123_s13  ;;  %p1805_p5 = pnand %p1220_p2, %p1768_p4 }
  0x7e   : > { %s284_s18 = sshll.u32 %s276_s11, 4  ;;  %s273_s15 = scalar_lea.sflag [#allocation3], %s272_s7  ;;  %s1809_s18 = int_to_ptr.vmem [resolvable:$true] %s284_s18 }
  0x7f   : > { %s1409_s1 = scalar_lea.hbm %s1801_s8, 128  ;;  %p1411_p7 = pneg %p1805_p5 }
  0x80   : > { %p1410_p8 = scmp.ne.s32.totalorder %s1801_s8, %s1409_s1  ;;  %s1414_s16 = scalar_lea.hbm %s2041_s0, 256 }
  0x81   : > { %p1415_p4 = scmp.lt.u32.totalorder %s1801_s8, %s2041_s0  ;;  %p1416_p6 = scmp.lt.u32.totalorder %s1414_s16, %s1409_s1 }
  0x82   : > { %p1412_p9 = pnand %p1411_p7, %p1410_p8  ;;  %p1418_p10 = scmp.lt.u32.totalorder %s1409_s1, %s1801_s8 }
  0x83   : > { %p1417_p3 = por %p1416_p6, %p1415_p4 }
  0x84   : > { %p1413_p1 = pneg %p1412_p9 }
  0x85   : > { %p1419_p13 = por %p1418_p10, %p1417_p3 }
  0x87   : > { %p1420_p2 = pnand %p1419_p13, %p1413_p1 }
  0x89   : > { %1423 = shalt.err (!%p1420_p2)
}
  0x8a   : > { %s1424_s7 = scalar_lea.vmem %s1809_s18, 128  ;;  %s1569_s11 = smov [#allocation2]  }
  0x8b   : > { %p1425_p8 = scmp.ne.s32.totalorder %s1809_s18, %s1424_s7  ;;  %s1429_s27 = sshll.u32 %s1569_s11, 4  ;;  %s1430_s27 = int_to_ptr.vmem [resolvable:$false] %s1429_s27 }
  0x8c   : > { %s1431_s13 = scalar_lea.vmem %s1430_s27, 256  ;;  %p1432_p12 = scmp.lt.s32.totalorder %s1809_s18, %s1430_s27 }
  0x8d   : > { %p1427_p9 = pnand %p1425_p8, %p1411_p7  ;;  %p1433_p4 = scmp.lt.s32.totalorder %s1431_s13, %s1424_s7 }
  0x8f   : > { %p1428_p0 = pneg %p1427_p9  ;;  %p1434_p6 = por %p1433_p4, %p1432_p12 }
  0x91   : > { %p1435_p3 = pnand %p1434_p6, %p1428_p0 }
  0x93   : > { %1438 = shalt.err (!%p1435_p3)
}
  0x94   : > { %1208 = dma.hbm_to_vmem [thread:$0]  (!%p1805_p5), %s1801_s8, 128, %s1809_s18, %s273_s15  }
  0x95   : > { %p2064_p1 = scmp.ne.s32.totalorder %s2054_s29, 0 }
  0x96   : > { %s1839_s1 = sand.u32 (!%p2064_p1), 1, %s1545_s22  }
  0x97   : > { %293 = sbr.rel (%p2064_p1) target bundleno = 981 (0x3d5), region = 40  ;;  %s1126_s16 = sshll.u32 (!%p2064_p1), %s1839_s1, 3 }
  0x98   : > { %s296_s12 = scalar_lea.sflag (!%p2064_p1), [#allocation3], %s1839_s1  ;;  %s299_s9 = scalar_lea.vmem (!%p2064_p1), [#allocation2], %s1126_s16 }
  0x9e   : > { %1520 = dma.done.wait (%p1780_p11), %s296_s12, 128  }
  0x9f   : > { %1522 = vsyncadd (%p1780_p11), %s296_s12, 4294967168  ;;  %p2065_p12 = scmp.ne.s32.totalorder %s2053_s28, 0 }
  0xa1   : > { %1524 = dma.done.wait (%p2065_p12), [#allocation6], 32  }
  0xa2   : > { %1526 = vsyncadd (%p2065_p12), [#allocation6], 4294967264 }
  0xa3   : > { %1528 = dma.done.wait (%p2065_p12), [#allocation9], 272  }
  0xa4   : > { %1530 = vsyncadd (%p2065_p12), [#allocation9], 4294967024  ;;  %vm353_vm0 = vcmask 261120   ;;  %v350_v0 = vld [vmem:[%s299_s9] sm:$0xff]  ;;  %v1293_v7 = vld [vmem:[#allocation8] sm:$0xff]   ;;  %v1570_v8 = vmov 0.0   ;;  %v464_v28 = vlaneseq }
  0xa5   : > { %v354_v1 = vsel %vm353_vm0, %v350_v0, 0.0  ;;  %1162 = vmatprep.subr.bf16.mxu0 %v1570_v8  ;;  %vm1571_vm1 = vmmov 0   ;;  %v1294_v9 = vld [vmem:[#allocation8 + $0x8] sm:$0xff]   ;;  %v1133_v14 = vld [vmem:[#allocation5] ss:$0 sm:$0xff]  ;;  %s1572_s28 = smov 104  }
  0xa6   : > { %355 = vadd.xlane.f32.xlu0 %v354_v1  ;;  %1166 = vmatprep.mubr.msk.bf16.mxu0 %vm1571_vm1, %v1570_v8  ;;  %v1134_v16 = vld [vmem:[#allocation7] ss:$0 sm:$0xff]  ;;  %v1135_v20 = vld [vmem:[#allocation10] ss:$0 sm:$0xff]  ;;  %s1573_s29 = smov 120   ;;  %s1574_s17 = smov 112  }
  0xa7   : > { %1163 = vmatpush3.bf16.msra.mxu0 %v1293_v7  ;;  %s1575_s8 = smov 96   ;;  %s1576_s18 = smov 88   ;;  %v1579_v26 = vmov 1983009808   ;;  %v1580_v29 = vmov 1934713408  }
  0xa8   : > { %1164 = vmatprep.subr.bf16.mxu0 %v1570_v8  ;;  %s1577_s10 = smov 80   ;;  %s1578_s15 = smov 72   ;;  %v462_v27 = vunpack.c.l.s4 %v1579_v26  ;;  %v494_v30 = vunpack.c.l.s4 %v1580_v29  ;;  %v465_v32 = vshrl.u32 %v464_v28, 7  ;;  %vm901_vm2 = vcmask 60416  }
  0xa9   : > { %s1131_s7 = sshll.u32 %s1839_s1, 4  ;;  %s1157_s27 = sshll.u32 %s1553_s24, 8 }
  0xaa   : > { %v463_v31 = vunpack.c.0.s8 %v462_v27  ;;  %v495_v35 = vunpack.c.0.s8 %v494_v30  ;;  %s341_s11 = scalar_lea.vmem [#allocation11], %s1131_s7  ;;  %s1898_s9 = scalar_lea.hbm %s2046_s5, %s1157_s27 }
  0xab   : > { %1165 = vmatpush3.bf16.msra.mxu0 %v1294_v9  ;;  %s942_s13 = sshll.u32 %s341_s11, 4  ;;  %p2066_p0 = scmp.ne.s32.totalorder %s2061_s19, 0  ;;  %s1900_s13 = int_to_ptr.vmem [resolvable:$true] %s942_s13 }
  0xac   : > { %v1861_v36 = vsub.s32 %v463_v31, %v465_v32  ;;  %v1864_v42 = vsub.s32 %v495_v35, %v465_v32 }
 0x133   : > { %v356_v2 = vpop.xlane.xlu0 %355 }
 0x134   : > { %v358_v3 = vmul.f32 0.03125, %v356_v2 }
 0x136   : > { %v359_v4 = vsub.f32 %v350_v0, %v358_v3 }
 0x138   : > { %v360_v5 = vmul.f32 %v359_v4, %v359_v4 }
 0x13a   : > { %v361_v6 = vsel %vm353_vm0, %v360_v5, 0.0 }
 0x13b   : > { %362 = vadd.xlane.f32.xlu0 %v361_v6 }
 0x1c8   : > { %v363_v10 = vpop.xlane.xlu0 %362 }
 0x1c9   : > { %v364_v11 = vmul.f32 0.03125, %v363_v10 }
 0x1cb   : > { %v365_v12 = vadd.f32 1e-05, %v364_v11 }
 0x1cd   : > { %1295 = vrsqrt.f32 %v365_v12 }
 0x1d7   : > { %v1296_v13 = vpop.eup %1295 }
 0x1d8   : > { %v367_v15 = vmul.f32 %v1296_v13, %v359_v4 }
 0x1da   : > { %v374_v17 = vmul.f32 %v1133_v14, %v367_v15 }
 0x1dc   : > { %v381_v18 = vadd.f32 %v1134_v16, %v374_v17 }
 0x1de   : > { %v382_v19 = vpack.c.bf16 %v381_v18, %v381_v18 }
 0x1e0   : > { %1167 = vmatmul.mubr.msk.bf16.vlgmr.msra.gmra.mrb[0].mxu0 %vm353_vm0, %v382_v19 }
 0x2b3   : > { %v443_v21 = vpop.f32.mrb[0].mxu0 }
 0x2b4   : > { %v444_v22 = vadd.f32 %v1135_v20, %v443_v21  ;;  %v1168_v23 = vpop.f32.mrb[1].mxu0 }
 0x2b5   : > { %v446_v24 = vpop.f32.mrb[2].mxu0 }
 0x2b6   : > { %456 = vrot.lane.b32.xlu0 %v444_v22, %s1572_s28  ;;  %450 = vrot.lane.b32.xlu1 %v444_v22, %s1573_s29  ;;  %v1169_v25 = vpop.f32.mrb[3].mxu0  ;;  %s923_s28 = scalar_lea.sflag [#allocation4], %s1839_s1  ;;  %s1439_s29 = scalar_lea.vmem %s1900_s13, 256 }
 0x2b7   : > { %p1440_p11 = scmp.ne.s32.totalorder %s1900_s13, %s1439_s29 }
 0x2b9   : > { %p1441_p5 = pnand %p1440_p11, %p2066_p0 }
 0x2ba   : > { %453 = vrot.lane.b32.xlu1 %v444_v22, %s1574_s17  ;;  %s1581_s17 = smov [#allocation11]  }
 0x2bb   : > { %p1442_p7 = pneg %p1441_p5 }
 0x2be   : > { %595 = vrot.lane.b32.xlu1 %v444_v22, %s1575_s8 }
 0x2c2   : > { %597 = vrot.lane.b32.xlu1 %v444_v22, %s1576_s18 }
 0x2c6   : > { %599 = vrot.lane.b32.xlu1 %v444_v22, %s1577_s10 }
 0x2ca   : > { %601 = vrot.lane.b32.xlu1 %v444_v22, %s1578_s15 }
 0x328   : > { %v457_v33 = vpop.permute.xlu0 %456  ;;  %v451_v34 = vpop.permute.xlu1 %450 }
 0x329   : > { %607 = vrot.lane.b32.xlu0 %v457_v33, %s1575_s8  ;;  %603 = vrot.lane.b32.xlu1 %v451_v34, %s1575_s8  ;;  %v475_v37 = vcombine.low %v451_v34, %v457_v33  ;;  %v476_v38 = vcombine.high %v451_v34, %v457_v33 }
 0x32b   : > { %v483_v43 = vrot.slane %v475_v37, %v1861_v36  ;;  %v490_v44 = vrot.slane %v476_v38, %v1861_v36 }
 0x32c   : > { %v454_v39 = vpop.permute.xlu1 %453 }
 0x32d   : > { %v459_v40 = vcombine.low %v444_v22, %v454_v39  ;;  %v460_v41 = vcombine.high %v444_v22, %v454_v39  ;;  %605 = vrot.lane.b32.xlu1 %v454_v39, %s1575_s8 }
 0x32f   : > { %v467_v45 = vrot.slane %v459_v40, %v1861_v36  ;;  %v474_v46 = vrot.slane %v460_v41, %v1861_v36 }
 0x330   : > { %v1870_v47 = vpop.permute.xlu1 %595 }
 0x331   : > { %v491_v48 = vcombine.low %v467_v45, %v483_v43  ;;  %v492_v49 = vcombine.high %v467_v45, %v483_v43  ;;  %v507_v50 = vcombine.low %v474_v46, %v490_v44  ;;  %v508_v51 = vcombine.high %v474_v46, %v490_v44  ;;  %609 = vrot.lane.b32.xlu1 %v1870_v47, %s1575_s8 }
 0x333   : > { %v499_v52 = vrot.slane %v491_v48, %v1864_v42  ;;  %v506_v53 = vrot.slane %v492_v49, %v1864_v42  ;;  %v515_v54 = vrot.slane %v507_v50, %v1864_v42  ;;  %v522_v55 = vrot.slane %v508_v51, %v1864_v42 }
 0x334   : > { %v598_v56 = vpop.permute.xlu1 %597 }
 0x335   : > { %v527_v57 = vcombine.low %v499_v52, %v506_v53  ;;  %v1139_v58 = vcombine.high %v499_v52, %v506_v53  ;;  %v543_v59 = vcombine.low %v515_v54, %v522_v55  ;;  %v1140_v60 = vcombine.high %v515_v54, %v522_v55  ;;  %611 = vrot.lane.b32.xlu0 %v598_v56, %s1575_s8 }
 0x337   : > { %v534_v61 = vrot.slane %v527_v57, %v1861_v36  ;;  %v542_v62 = vrot.slane %v1139_v58, %v1861_v36  ;;  %v550_v63 = vrot.slane %v543_v59, %v1861_v36  ;;  %v558_v0 = vrot.slane %v1140_v60, %v1861_v36 }
 0x338   : > { %v600_v1 = vpop.permute.xlu1 %599 }
 0x339   : > { %v559_v2 = vcombine.low %v534_v61, %v542_v62  ;;  %v560_v3 = vcombine.high %v534_v61, %v542_v62  ;;  %v575_v4 = vcombine.low %v550_v63, %v558_v0  ;;  %v576_v5 = vcombine.high %v550_v63, %v558_v0  ;;  %613 = vrot.lane.b32.xlu1 %v600_v1, %s1575_s8 }
 0x33b   : > { %v567_v6 = vrot.slane %v559_v2, %v1864_v42  ;;  %v574_v7 = vrot.slane %v560_v3, %v1864_v42  ;;  %v583_v8 = vrot.slane %v575_v4, %v1864_v42  ;;  %v590_v9 = vrot.slane %v576_v5, %v1864_v42 }
 0x33c   : > { %v602_v10 = vpop.permute.xlu1 %601 }
 0x33d   : > { %v591_v11 = vcombine.low %v567_v6, %v583_v8  ;;  %v592_v12 = vcombine.high %v567_v6, %v583_v8  ;;  %v593_v13 = vcombine.low %v574_v7, %v590_v9  ;;  %v594_v14 = vcombine.high %v574_v7, %v590_v9  ;;  %615 = vrot.lane.b32.xlu0 %v602_v10, %s1575_s8  ;;  %s1443_s8 = sshll.u32 %s1581_s17, 4  ;;  %s1444_s8 = int_to_ptr.vmem [resolvable:$false] %s1443_s8 }
 0x33e   : > { %s1445_s18 = scalar_lea.vmem %s1444_s8, 512  ;;  %p1446_p10 = scmp.lt.s32.totalorder %s1900_s13, %s1444_s8 }
 0x33f   : > { %v897_v15 = vpack.c.bf16 %v591_v11, %v591_v11  ;;  %v898_v16 = vpack.c.bf16 %v592_v12, %v592_v12  ;;  %v899_v17 = vpack.c.bf16 %v593_v13, %v593_v13  ;;  %v900_v18 = vpack.c.bf16 %v594_v14, %v594_v14  ;;  %p1447_p13 = scmp.lt.s32.totalorder %s1445_s18, %s1439_s29 }
 0x341   : > { %902 = vst.msk [vmem:[%s341_s11] sm:$0xf] %vm901_vm2, %v897_v15  ;;  %903 = vst.msk [vmem:[%s341_s11 + $0x4] sm:$0xf] %vm901_vm2, %v898_v16  ;;  %p1448_p2 = por %p1447_p13, %p1446_p10 }
 0x342   : > { %904 = vst.msk [vmem:[%s341_s11 + $0x8] sm:$0xf] %vm901_vm2, %v899_v17  ;;  %905 = vst.msk [vmem:[%s341_s11 + $0xc] sm:$0xf] %vm901_vm2, %v900_v18 }
 0x343   : > { %p1449_p8 = pnand %p1448_p2, %p1442_p7 }
 0x345   : > { %1452 = shalt.err (!%p1449_p8)
}
 0x346   : > { %s1453_s10 = scalar_lea.hbm %s1898_s9, 256  ;;  %s1457_s11 = scalar_lea.hbm %s2046_s5, 512 }
 0x347   : > { %p1454_p9 = scmp.ne.s32.totalorder %s1898_s9, %s1453_s10  ;;  %p1458_p3 = scmp.lt.u32.totalorder %s1898_s9, %s2046_s5 }
 0x348   : > { %p1459_p1 = scmp.lt.u32.totalorder %s1457_s11, %s1453_s10  ;;  %p1461_p11 = scmp.lt.u32.totalorder %s1453_s10, %s1898_s9 }
 0x349   : > { %p1455_p4 = pnand %p1454_p9, %p2066_p0 }
 0x34a   : > { %p1460_p12 = por %p1459_p1, %p1458_p3 }
 0x34b   : > { %p1456_p6 = pneg %p1455_p4 }
 0x34c   : > { %p1462_p5 = por %p1461_p11, %p1460_p12 }
 0x34e   : > { %p1463_p7 = pnand %p1462_p5, %p1456_p6 }
 0x350   : > { %1466 = shalt.err (!%p1463_p7)
}
 0x351   : > { %s1582_s12 = smov 64   ;;  %s1583_s29 = smov 4  }
 0x352   : > { %1188 = dma.vmem_to_hbm [thread:$0]  (%p2066_p0), %s1900_s13, 256, %s1898_s9, %s923_s28, %s1582_s12, %s1582_s12, %s1583_s29  }
 0x353   : > { %s1132_s13 = sshll.u32 %s1839_s1, 5  ;;  %s1158_s28 = sshll.u32 %s1553_s24, 9 }
 0x354   : > { %s1952_s9 = scalar_lea.vmem [#allocation12], %s1132_s13  ;;  %s1979_s10 = scalar_lea.hbm %s2047_s6, %s1158_s28 }
 0x355   : > { %s959_s17 = sshll.u32 %s1952_s9, 4  ;;  %s928_s24 = scalar_lea.sflag [#allocation13], %s1839_s1  ;;  %s1981_s17 = int_to_ptr.vmem [resolvable:$true] %s959_s17 }
 0x356   : > { %s1467_s15 = scalar_lea.vmem %s1981_s17, 512  ;;  %s1584_s7 = smov [#allocation12]  }
 0x357   : > { %p1468_p10 = scmp.ne.s32.totalorder %s1981_s17, %s1467_s15  ;;  %s1471_s11 = sshll.u32 %s1584_s7, 4  ;;  %s1472_s11 = int_to_ptr.vmem [resolvable:$false] %s1471_s11 }
 0x358   : > { %s1473_s27 = scalar_lea.vmem %s1472_s11, 1024  ;;  %p1474_p8 = scmp.lt.s32.totalorder %s1981_s17, %s1472_s11 }
 0x359   : > { %p1469_p13 = pnand %p1468_p10, %p2066_p0  ;;  %p1475_p9 = scmp.lt.s32.totalorder %s1473_s27, %s1467_s15 }
 0x35b   : > { %p1470_p2 = pneg %p1469_p13  ;;  %p1476_p4 = por %p1475_p9, %p1474_p8 }
 0x35d   : > { %p1477_p6 = pnand %p1476_p4, %p1470_p2 }
 0x39b   : > { %v608_v19 = vpop.permute.xlu0 %607  ;;  %v604_v20 = vpop.permute.xlu1 %603 }
 0x39c   : > { %v641_v21 = vcombine.low %v604_v20, %v608_v19  ;;  %v642_v22 = vcombine.high %v604_v20, %v608_v19 }
 0x39e   : > { %v649_v26 = vrot.slane %v641_v21, %v1861_v36  ;;  %v656_v27 = vrot.slane %v642_v22, %v1861_v36 }
 0x39f   : > { %v606_v23 = vpop.permute.xlu1 %605 }
 0x3a0   : > { %v625_v24 = vcombine.low %v1870_v47, %v606_v23  ;;  %v626_v25 = vcombine.high %v1870_v47, %v606_v23 }
 0x3a2   : > { %v633_v28 = vrot.slane %v625_v24, %v1861_v36  ;;  %v640_v29 = vrot.slane %v626_v25, %v1861_v36 }
 0x3a3   : > { %v610_v44 = vpop.permute.xlu1 %609 }
 0x3a4   : > { %v689_v30 = vcombine.low %v633_v28, %v649_v26  ;;  %v690_v31 = vcombine.high %v633_v28, %v649_v26  ;;  %v705_v32 = vcombine.low %v640_v29, %v656_v27  ;;  %v706_v33 = vcombine.high %v640_v29, %v656_v27 }
 0x3a6   : > { %v697_v34 = vrot.slane %v689_v30, %v1864_v42  ;;  %v704_v35 = vrot.slane %v690_v31, %v1864_v42  ;;  %v713_v37 = vrot.slane %v705_v32, %v1864_v42  ;;  %v720_v38 = vrot.slane %v706_v33, %v1864_v42 }
 0x3a7   : > { %v612_v49 = vpop.permute.xlu0 %611 }
 0x3a8   : > { %v1141_v39 = vcombine.low %v697_v34, %v704_v35  ;;  %v1143_v40 = vcombine.high %v697_v34, %v704_v35  ;;  %v1145_v41 = vcombine.low %v713_v37, %v720_v38  ;;  %v1147_v43 = vcombine.high %v713_v37, %v720_v38 }
 0x3aa   : > { %v769_v45 = vrot.slane %v1141_v39, %v1861_v36  ;;  %v785_v46 = vrot.slane %v1143_v40, %v1861_v36  ;;  %v801_v47 = vrot.slane %v1145_v41, %v1861_v36  ;;  %v817_v48 = vrot.slane %v1147_v43, %v1861_v36 }
 0x3ab   : > { %v614_v54 = vpop.permute.xlu1 %613 }
 0x3ac   : > { %v825_v50 = vcombine.low %v769_v45, %v785_v46  ;;  %v826_v51 = vcombine.high %v769_v45, %v785_v46  ;;  %v857_v52 = vcombine.low %v801_v47, %v817_v48  ;;  %v858_v53 = vcombine.high %v801_v47, %v817_v48 }
 0x3ad   : > { %v657_v59 = vcombine.low %v610_v44, %v614_v54  ;;  %v658_v60 = vcombine.high %v610_v44, %v614_v54 }
 0x3ae   : > { %v833_v55 = vrot.slane %v825_v50, %v1864_v42  ;;  %v840_v56 = vrot.slane %v826_v51, %v1864_v42  ;;  %v865_v57 = vrot.slane %v857_v52, %v1864_v42  ;;  %v872_v58 = vrot.slane %v858_v53, %v1864_v42 }
 0x3af   : > { %v616_v61 = vpop.permute.xlu0 %615  ;;  %v665_v8 = vrot.slane %v657_v59, %v1861_v36  ;;  %v672_v9 = vrot.slane %v658_v60, %v1861_v36 }
 0x3b0   : > { %v889_v62 = vcombine.low %v833_v55, %v865_v57  ;;  %v890_v63 = vcombine.high %v833_v55, %v865_v57  ;;  %v891_v0 = vcombine.low %v840_v56, %v872_v58  ;;  %v892_v1 = vcombine.high %v840_v56, %v872_v58 }
 0x3b1   : > { %v673_v2 = vcombine.low %v612_v49, %v616_v61  ;;  %v674_v3 = vcombine.high %v612_v49, %v616_v61 }
 0x3b2   : > { %v906_v4 = vpack.c.bf16 %v889_v62, %v889_v62  ;;  %v907_v5 = vpack.c.bf16 %v890_v63, %v890_v63  ;;  %v908_v6 = vpack.c.bf16 %v891_v0, %v891_v0  ;;  %v909_v7 = vpack.c.bf16 %v892_v1, %v892_v1 }
 0x3b3   : > { %v681_v10 = vrot.slane %v673_v2, %v1861_v36  ;;  %v688_v11 = vrot.slane %v674_v3, %v1861_v36 }
 0x3b4   : > { %914 = vst.msk [vmem:[%s1952_s9] sm:$0xf] %vm901_vm2, %v906_v4  ;;  %915 = vst.msk [vmem:[%s1952_s9 + $0x4] sm:$0xf] %vm901_vm2, %v907_v5 }
 0x3b5   : > { %916 = vst.msk [vmem:[%s1952_s9 + $0x8] sm:$0xf] %vm901_vm2, %v908_v6  ;;  %917 = vst.msk [vmem:[%s1952_s9 + $0xc] sm:$0xf] %vm901_vm2, %v909_v7  ;;  %v721_v12 = vcombine.low %v665_v8, %v681_v10  ;;  %v722_v13 = vcombine.high %v665_v8, %v681_v10  ;;  %v737_v14 = vcombine.low %v672_v9, %v688_v11 }
 0x3b6   : > { %v738_v15 = vcombine.high %v672_v9, %v688_v11 }
 0x3b7   : > { %v729_v16 = vrot.slane %v721_v12, %v1864_v42  ;;  %v736_v17 = vrot.slane %v722_v13, %v1864_v42  ;;  %v745_v18 = vrot.slane %v737_v14, %v1864_v42 }
 0x3b8   : > { %v752_v19 = vrot.slane %v738_v15, %v1864_v42 }
 0x3b9   : > { %v1142_v20 = vcombine.low %v729_v16, %v736_v17  ;;  %v1144_v21 = vcombine.high %v729_v16, %v736_v17 }
 0x3ba   : > { %v1146_v22 = vcombine.low %v745_v18, %v752_v19  ;;  %v1148_v23 = vcombine.high %v745_v18, %v752_v19 }
 0x3bb   : > { %v776_v24 = vrot.slane %v1142_v20, %v1861_v36  ;;  %v792_v25 = vrot.slane %v1144_v21, %v1861_v36 }
 0x3bc   : > { %v808_v26 = vrot.slane %v1146_v22, %v1861_v36  ;;  %v824_v27 = vrot.slane %v1148_v23, %v1861_v36 }
 0x3bd   : > { %v841_v28 = vcombine.low %v776_v24, %v792_v25  ;;  %v842_v29 = vcombine.high %v776_v24, %v792_v25 }
 0x3be   : > { %v873_v30 = vcombine.low %v808_v26, %v824_v27  ;;  %v874_v31 = vcombine.high %v808_v26, %v824_v27 }
 0x3bf   : > { %v849_v32 = vrot.slane %v841_v28, %v1864_v42  ;;  %v856_v33 = vrot.slane %v842_v29, %v1864_v42 }
 0x3c0   : > { %v881_v34 = vrot.slane %v873_v30, %v1864_v42  ;;  %v888_v35 = vrot.slane %v874_v31, %v1864_v42 }
 0x3c2   : > { %v893_v36 = vcombine.low %v849_v32, %v881_v34  ;;  %v894_v37 = vcombine.high %v849_v32, %v881_v34  ;;  %v895_v38 = vcombine.low %v856_v33, %v888_v35  ;;  %v896_v39 = vcombine.high %v856_v33, %v888_v35 }
 0x3c4   : > { %v910_v40 = vpack.c.bf16 %v893_v36, %v893_v36  ;;  %v911_v41 = vpack.c.bf16 %v894_v37, %v894_v37  ;;  %v912_v43 = vpack.c.bf16 %v895_v38, %v895_v38  ;;  %v913_v44 = vpack.c.bf16 %v896_v39, %v896_v39 }
 0x3c6   : > { %918 = vst.msk [vmem:[%s1952_s9 + $0x10] sm:$0xf] %vm901_vm2, %v910_v40  ;;  %919 = vst.msk [vmem:[%s1952_s9 + $0x14] sm:$0xf] %vm901_vm2, %v911_v41 }
 0x3c7   : > { %920 = vst.msk [vmem:[%s1952_s9 + $0x18] sm:$0xf] %vm901_vm2, %v912_v43  ;;  %921 = vst.msk [vmem:[%s1952_s9 + $0x1c] sm:$0xf] %vm901_vm2, %v913_v44 }
 0x3c8   : > { %1480 = shalt.err (!%p1477_p6)
}
 0x3c9   : > { %s1481_s16 = scalar_lea.hbm %s1979_s10, 512  ;;  %s1485_s28 = scalar_lea.hbm %s2047_s6, 1024 }
 0x3ca   : > { %p1482_p3 = scmp.ne.s32.totalorder %s1979_s10, %s1481_s16  ;;  %p1486_p11 = scmp.lt.u32.totalorder %s1979_s10, %s2047_s6 }
 0x3cb   : > { %p1487_p5 = scmp.lt.u32.totalorder %s1485_s28, %s1481_s16  ;;  %p1489_p10 = scmp.lt.u32.totalorder %s1481_s16, %s1979_s10 }
 0x3cc   : > { %p1483_p1 = pnand %p1482_p3, %p2066_p0 }
 0x3cd   : > { %p1488_p7 = por %p1487_p5, %p1486_p11 }
 0x3ce   : > { %p1484_p12 = pneg %p1483_p1 }
 0x3cf   : > { %p1490_p13 = por %p1489_p10, %p1488_p7 }
 0x3d1   : > { %p1491_p2 = pnand %p1490_p13, %p1484_p12 }
 0x3d3   : > { %1494 = shalt.err (!%p1491_p2)
}
 0x3d4   : > { %1189 = dma.vmem_to_hbm [thread:$0]  (%p2066_p0), %s1981_s17, 512, %s1979_s10, %s928_s24, %s1582_s12, %s1582_s12, %s1583_s29  }
 0x3d5 PF: > { %s974_s15 = sand.u32 1, %s1541_s21   ;;  %p2067_p8 = scmp.ne.s32.totalorder %s2062_s30, 0 }
 0x3d6   : > { %p2068_p9 = scmp.ge.s32.totalorder %s1561_s26, 2  ;;  %s975_s7 = scalar_lea.sflag [#allocation4], %s974_s15 }
 0x3d8   : > { %p1210_p4 = pnand %p2068_p9, %p2067_p8 }
 0x3da   : > { %1532 = dma.done.wait (!%p1210_p4), %s975_s7, 256  }
 0x3db   : > { %1534 = vsyncadd (!%p1210_p4), %s975_s7, 4294967040  ;;  %s984_s19 = scalar_lea.sflag [#allocation13], %s974_s15 }
 0x3dc   : > { %1536 = dma.done.wait (!%p1210_p4), %s984_s19, 512  }
 0x3dd   : > { %1538 = vsyncadd (!%p1210_p4), %s984_s19, 4294966784  ;;  %s28_s26 = sadd.s32 1, %s1561_s26   ;;  %s2069_s21 = smov %s1545_s22 }
 0x3de   : > { %p25_p6 = scmp.ge.s32.totalorder %s28_s26, 4   ;;  %s2070_s22 = smov %s1549_s23 }
 0x3df   : > { %s2071_s23 = smov %s1789_s20  ;;  %s2072_s24 = smov %s1557_s25 }
 0x3e0   : > { %s2073_s25 = smov %s2075_s14  ;;  %27 = sbr.rel (!%p25_p6) target bundleno = 12 (0xc), region = 118 }
 0x3e7   :  { %989 = vsyncpa [#allocation3], 1 }
 0x3e8   :  { %991 = vsyncpa [#allocation3 + $0x1], 1 }
 0x3e9   :  { %992 = vsyncpa [#allocation6], 1 }
 0x3ea   :  { %993 = vsyncpa [#allocation9], 1 }
 0x3eb   :  { %994 = vsyncpa [#allocation4], 1 }
 0x3ec   :  { %996 = vsyncpa [#allocation4 + $0x1], 1 }
 0x3ed   :  { %997 = vsyncpa [#allocation13], 1 }
 0x3ee   :  { %999 = vsyncpa [#allocation13 + $0x1], 1 }

</bundles_post_ra>
